<compile_context>
chip_gen: v5e
topology: v5e:2x2
jax: 0.10.0
libtpu: 0.0.40
codegen_flags: <defaults>
</compile_context>

<pallas_src>
import functools

import jax
import jax.numpy as jnp
from jax.experimental import pallas as pl
from jax.experimental.pallas import tpu as pltpu

_EPS = 1e-5


# --------------------------------------------------------------------------
# Kernel
# --------------------------------------------------------------------------
def _upscale_kernel(x_ref, w_ref, o_ref, acc_ref, *, rows_per_chunk):
    """One (batch, channel-tile) grid step.

    x_ref:   (1, HW, Cin)      bf16 fused-concat input stream
    w_ref:   (1, Cin, 4*Ct)    packed weights, lanes ordered [sub-pos k][chan c]
    o_ref:   (1, HW, 4*Ct)     normalized + ReLU output, same lane packing
    acc_ref: (HW, 4*Ct) f32    VMEM scratch (matmul accumulator)
    """
    # Single MXU matmul (K = total concatenated Cin), f32 accumulation.
    # ConvTranspose bias omitted: cancelled by the InstanceNorm mean-subtract.
    acc_ref[...] = jnp.dot(x_ref[0], w_ref[0], preferred_element_type=jnp.float32)

    hw, c4 = acc_ref.shape
    ct = c4 // 4
    n_chunks = hw // rows_per_chunk

    # One fused traversal for sum and sum-of-squares (no full acc*acc slab).
    def stats_body(i, carry):
        s, ss = carry
        r0 = pl.multiple_of(i * rows_per_chunk, rows_per_chunk)
        blk = acc_ref[pl.ds(r0, rows_per_chunk), :]            # (rg, 4*Ct) f32
        s = s + blk.sum(0, keepdims=True)
        ss = ss + (blk * blk).sum(0, keepdims=True)
        return s, ss

    zeros = jnp.zeros((1, c4), jnp.float32)
    col_s, col_ss = jax.lax.fori_loop(0, n_chunks, stats_body, (zeros, zeros))

    # Fold the 4 sub-position lane groups into per-channel stats: the
    # InstanceNorm spatial extent is all HW rows x 4 sub-positions.
    s = col_s[:, 0:ct]
    ss = col_ss[:, 0:ct]
    for k in range(1, 4):
        s = s + col_s[:, k * ct:(k + 1) * ct]
        ss = ss + col_ss[:, k * ct:(k + 1) * ct]
    total = jnp.float32(4 * hw)
    mean = s / total
    var = ss / total - mean * mean                              # biased variance
    inv = jax.lax.rsqrt(var + _EPS)

    mean4 = jnp.concatenate([mean] * 4, axis=-1)                # (1, 4*Ct)
    inv4 = jnp.concatenate([inv] * 4, axis=-1)

    # Single lane-dense store of the whole normalized slab.
    o_ref[0] = jnp.maximum((acc_ref[...] - mean4) * inv4, 0.0).astype(o_ref.dtype)


# --------------------------------------------------------------------------
# Wrapper helpers
# --------------------------------------------------------------------------
def _pick_channel_tile(cout, batch, max_ct=64):
    """Channel tile Ct.  Keep 4*Ct a multiple of 128 when tiling; prefer more
    grid steps (Ct=32 -> 4*Ct=128) when batch*tiles is too small for 2 TCs."""
    candidates = [ct for ct in (64, 32) if ct <= max_ct and cout % ct == 0]
    if not candidates:
        return cout                       # single tile (toy / odd channel counts)
    ct = candidates[0]
    if batch * (cout // ct) < 4 and cout % 32 == 0:
        ct = 32                           # more parallel steps, still lane-dense
    return ct


def _pick_rows_per_chunk(hw):
    for rg in (512, 256, 128, 64, 32, 16, 8):
        if hw % rg == 0:
            return rg
    return hw


def _pack_weight(w4, ct):
    """(4, Cin, Cout) -> (nt, Cin, 4*Ct); packed[j, ci, k*Ct+c] = w4[k, ci, j*Ct+c]."""
    _, cin, cout = w4.shape
    nt = cout // ct
    w = w4.reshape(4, cin, nt, ct)        # (k, ci, j, c)
    w = jnp.transpose(w, (2, 1, 0, 3))    # (j, ci, k, c)
    return w.reshape(nt, cin, 4 * ct)


def _ceil_to(x, m):
    return -(-x // m) * m


def _vmem_limit_bytes(hw, cin, ct, in_itemsize, out_itemsize):
    """Per-step VMEM footprint (lane/sublane-padded) + headroom, clamped so it
    is valid on every generation (v7x physical VMEM is 64 MiB per TC)."""
    hw_p = _ceil_to(hw, 8)
    x_tile = hw_p * _ceil_to(cin, 128) * in_itemsize
    w_tile = _ceil_to(cin, 8) * _ceil_to(4 * ct, 128) * in_itemsize
    o_tile = hw_p * _ceil_to(4 * ct, 128) * out_itemsize
    acc = hw_p * _ceil_to(4 * ct, 128) * 4
    need = 2 * (x_tile + w_tile + o_tile) + acc       # double-buffered IO + scratch
    need = int(1.5 * need) + (4 << 20)                # headroom (norm temps, internal)
    return max(32 << 20, min(need, 64 << 20))


# --------------------------------------------------------------------------
# One upscale block: ConvTranspose2d(k=2,s=2) + InstanceNorm2d + ReLU
# --------------------------------------------------------------------------
def upscale_block(x_nhwc, w4, *, compute_dtype=jnp.bfloat16,
                  out_dtype=jnp.bfloat16, max_ct=64):
    """`x_nhwc`: (N, H, W, Cin) input (already channel-concatenated).
    `w4`: (4, Cin, Cout) with index 2*kh+kw (ConvTranspose2d weight
    W[ci, co, kh, kw] rearranged as w4[2*kh+kw, ci, co])."""
    N, H, W, cin = (int(d) for d in x_nhwc.shape)
    cout = int(w4.shape[-1])
    ct = _pick_channel_tile(cout, N, max_ct)
    nt = cout // ct
    hw = H * W

    x = x_nhwc.reshape(N, hw, cin).astype(compute_dtype)   # no-op if already bf16
    w = _pack_weight(w4, ct).astype(compute_dtype)          # (nt, Cin, 4*Ct)

    rows = _pick_rows_per_chunk(hw)
    kernel = functools.partial(_upscale_kernel, rows_per_chunk=rows)

    in_itemsize = jnp.dtype(compute_dtype).itemsize
    out_itemsize = jnp.dtype(out_dtype).itemsize
    cost = pl.CostEstimate(
        flops=2 * N * hw * cin * 4 * cout,
        transcendentals=N * cout,                            # rsqrt per (n, c)
        bytes_accessed=(N * hw * cin * in_itemsize
                        + nt * cin * 4 * ct * in_itemsize
                        + N * hw * 4 * cout * out_itemsize))

    out = pl.pallas_call(
        kernel,
        out_shape=jax.ShapeDtypeStruct((N, hw, nt * 4 * ct), out_dtype),
        grid_spec=pltpu.PrefetchScalarGridSpec(
            num_scalar_prefetch=0,
            grid=(N, nt),
            in_specs=[pl.BlockSpec((1, hw, cin), lambda n, j: (n, 0, 0)),
                      pl.BlockSpec((1, cin, 4 * ct), lambda n, j: (j, 0, 0))],
            out_specs=pl.BlockSpec((1, hw, 4 * ct), lambda n, j: (n, 0, j)),
            scratch_shapes=[pltpu.VMEM((hw, 4 * ct), jnp.float32)]),
        compiler_params=pltpu.CompilerParams(
            dimension_semantics=("parallel", "parallel"),
            vmem_limit_bytes=_vmem_limit_bytes(hw, cin, ct, in_itemsize,
                                               out_itemsize)),
        cost_estimate=cost,
    )(x, w)

    # Interleave glue (XLA, bf16): (N, HW, nt*4*Ct) -> (N, 2H, 2W, Cout).
    # out[n, h*W+w, j*4*Ct + (2*kh+kw)*Ct + c] is pixel (2h+kh, 2w+kw), channel
    # j*Ct + c.  XLA fuses this transpose with the next block's channel concat.
    out = out.reshape(N, H, W, nt, 2, 2, ct)
    out = jnp.transpose(out, (0, 1, 4, 2, 5, 3, 6))          # (n, h, kh, w, kw, j, c)
    return out.reshape(N, 2 * H, 2 * W, cout)


def upscale_concat(features, weights, **kwargs):
    """features: list of NHWC arrays, smallest spatial first
    (== the reversed(features.items()) order of the PyTorch module)."""
    output = None
    for idx, feat in enumerate(features):
        if output is None:
            x = feat
        else:
            # torch.cat([output, feature], dim=1) in NHWC; done here (not in
            # the kernel) so the block runs a single K = sum(Cin) MXU matmul
            # and XLA fuses the concat with the interleave transpose above.
            x = jnp.concatenate([output, feat.astype(output.dtype)], axis=-1)
        output = upscale_block(x, weights[idx], **kwargs)
    return output


# ---------------- pure-JAX reference (for correctness check) ----------------
def _ref_block(x_nhwc, w4, bias, compute_dtype):
    N, H, W, _ = x_nhwc.shape
    cout = w4.shape[-1]
    y = jnp.einsum("nhwc,kcd->nkhwd",
                   x_nhwc.astype(compute_dtype), w4.astype(compute_dtype),
                   preferred_element_type=jnp.float32) + bias
    y = y.reshape(N, 2, 2, H, W, cout)
    y = jnp.transpose(y, (0, 3, 1, 4, 2, 5)).reshape(N, 2 * H, 2 * W, cout)
    mean = y.mean(axis=(1, 2), keepdims=True)
    var = y.var(axis=(1, 2), keepdims=True)
    return jnp.maximum((y - mean) * jax.lax.rsqrt(var + _EPS), 0.0)


def _ref_upscale_concat(features, weights, biases, compute_dtype):
    output = None
    for idx, feat in enumerate(features):
        x = feat if output is None else jnp.concatenate([output, feat], axis=-1)
        output = _ref_block(x, weights[idx], biases[idx], compute_dtype)
    return output


if __name__ == "__main__":
    key = jax.random.PRNGKey(0)
    feature_size = 8      # C
    num_upscales = 3
    batch = 2
    base_hw = 4           # smallest feature spatial size

    # Parameters: block idx handles channels = C*(idx+1).
    weights, biases = [], []
    for idx in range(num_upscales):
        ch = feature_size * (idx + 1)
        key, kw_, kb_ = jax.random.split(key, 3)
        weights.append(0.1 * jax.random.normal(kw_, (4, ch, ch), dtype=jnp.float32))
        biases.append(0.1 * jax.random.normal(kb_, (ch,), dtype=jnp.float32))

    # Features, smallest spatial first; each has C channels, spatial doubles.
    features = []
    for idx in range(num_upscales):
        key, kf = jax.random.split(key)
        hw = base_hw * (2 ** idx)
        features.append(
            jax.random.normal(kf, (batch, hw, hw, feature_size), dtype=jnp.float32))

    expected_shape = (batch,
                      base_hw * (2 ** num_upscales),
                      base_hw * (2 ** num_upscales),
                      feature_size * num_upscales)

    # 1) Production path: bf16 output + bf16 inter-block activations.
    out_bf16 = jax.block_until_ready(upscale_concat(features, weights))
    assert out_bf16.shape == expected_shape, (out_bf16.shape, expected_shape)
    assert out_bf16.dtype == jnp.bfloat16
    assert bool(jnp.all(jnp.isfinite(out_bf16.astype(jnp.float32))))

    # 2) Tight single-block check (f32 output; identical bf16 matmul inputs ->
    #    only accumulation / reduction-order noise vs. the reference).  Biases
    #    are deliberately NOT passed to the kernel: InstanceNorm2d(affine=False)
    #    mean-subtraction cancels them exactly; the reference keeps them.
    blk = jax.block_until_ready(
        upscale_block(features[0], weights[0], out_dtype=jnp.float32))
    blk_ref = jax.block_until_ready(
        _ref_block(features[0], weights[0], biases[0], jnp.bfloat16))
    assert jnp.allclose(blk, blk_ref, rtol=2e-3, atol=2e-3), \
        float(jnp.abs(blk - blk_ref).max())

    # 3) Full-chain check with f32 inter-block activations (both pipelines
    #    re-quantize the matmul inputs to bf16 each block; allow a few ulps).
    out_f32 = jax.block_until_ready(
        upscale_concat(features, weights, out_dtype=jnp.float32))
    ref = jax.block_until_ready(
        _ref_upscale_concat(features, weights, biases, jnp.bfloat16))
    assert jnp.allclose(out_f32, ref, rtol=3e-2, atol=3e-2), \
        float(jnp.abs(out_f32 - ref).max())

    print("KERNEL_OK")
</pallas_src>

<mosaic_0001>
module attributes {stable_mosaic.version = 11 : i64} {
  func.func @_upscale_kernel(%arg0: i32, %arg1: i32, %arg2: memref<1x16x8xbf16, #tpu.memory_space<vmem>>, %arg3: memref<1x8x32xbf16, #tpu.memory_space<vmem>>, %arg4: memref<1x16x32xbf16, #tpu.memory_space<vmem>>, %arg5: memref<16x32xf32, #tpu.memory_space<vmem>>) attributes {dimension_semantics = [#tpu.dimension_semantics<parallel>, #tpu.dimension_semantics<parallel>], iteration_bounds = array<i64: 2, 1>, scalar_prefetch = 0 : i64, scratch_operands = 1 : i64, tpu.core_type = #tpu.core_type<tc>, window_params = [{transform_indices = @transform_0, window_bounds = array<i64: 1, 16, 8>}, {transform_indices = @transform_1, window_bounds = array<i64: 1, 8, 32>}, {transform_indices = @transform_2, window_bounds = array<i64: 1, 16, 32>}]} {
    %c0 = arith.constant 0 : index
    %c0_0 = arith.constant 0 : index
    %c0_1 = arith.constant 0 : index
    %0 = vector.load %arg2[%c0, %c0_0, %c0_1] : memref<1x16x8xbf16, #tpu.memory_space<vmem>>, vector<1x16x8xbf16>
    %1 = vector.shape_cast %0 : vector<1x16x8xbf16> to vector<16x8xbf16>
    %c0_2 = arith.constant 0 : index
    %c0_3 = arith.constant 0 : index
    %c0_4 = arith.constant 0 : index
    %2 = vector.load %arg3[%c0_2, %c0_3, %c0_4] : memref<1x8x32xbf16, #tpu.memory_space<vmem>>, vector<1x8x32xbf16>
    %3 = vector.shape_cast %2 : vector<1x8x32xbf16> to vector<8x32xbf16>
    %cst = arith.constant dense<0.000000e+00> : vector<16x32xf32>
    %4 = tpu.matmul %1, %3, %cst {dimension_numbers = #tpu.dot_dimension_numbers<[1], [0], [0], [1], [0, 0, 1, 1], [], []>} : vector<16x8xbf16>, vector<8x32xbf16>, vector<16x32xf32> -> vector<16x32xf32>
    %c0_5 = arith.constant 0 : index
    %c0_6 = arith.constant 0 : index
    %5 = vector.load %arg5[%c0_5, %c0_6] : memref<16x32xf32, #tpu.memory_space<vmem>>, vector<16x32xf32>
    tpu.vector_store %arg5[%c0_5, %c0_6], %4 {strides = array<i32>} : memref<16x32xf32, #tpu.memory_space<vmem>>, vector<16x32xf32>,
    %cst_7 = arith.constant 0.000000e+00 : f32
    %6 = vector.broadcast %cst_7 : f32 to vector<1x32xf32>
    %c0_i32 = arith.constant 0 : i32
    %c16_i32 = arith.constant 16 : i32
    %7 = arith.muli %c0_i32, %c16_i32 : i32
    %8 = tpu.assume_multiple %7, 16 : i32
    %9 = arith.index_cast %8 : i32 to index
    %c0_8 = arith.constant 0 : index
    %10 = vector.load %arg5[%9, %c0_8] : memref<16x32xf32, #tpu.memory_space<vmem>>, vector<16x32xf32>
    %cst_9 = arith.constant dense<0.000000e+00> : vector<32xf32>
    %11 = vector.multi_reduction <add>, %10, %cst_9 [0] : vector<16x32xf32> to vector<32xf32>
    %12 = vector.shape_cast %11 : vector<32xf32> to vector<1x32xf32>
    %13 = arith.addf %6, %12 : vector<1x32xf32>
    %14 = arith.mulf %10, %10 : vector<16x32xf32>
    %cst_10 = arith.constant dense<0.000000e+00> : vector<32xf32>
    %15 = vector.multi_reduction <add>, %14, %cst_10 [0] : vector<16x32xf32> to vector<32xf32>
    %16 = vector.shape_cast %15 : vector<32xf32> to vector<1x32xf32>
    %17 = arith.addf %6, %16 : vector<1x32xf32>
    %c1_i32 = arith.constant 1 : i32
    %18 = vector.extract_strided_slice %13 {offsets = [0, 0], sizes = [1, 8], strides = [1, 1]} : vector<1x32xf32> to vector<1x8xf32>
    %19 = vector.extract_strided_slice %17 {offsets = [0, 0], sizes = [1, 8], strides = [1, 1]} : vector<1x32xf32> to vector<1x8xf32>
    %20 = vector.extract_strided_slice %13 {offsets = [0, 8], sizes = [1, 8], strides = [1, 1]} : vector<1x32xf32> to vector<1x8xf32>
    %21 = arith.addf %18, %20 : vector<1x8xf32>
    %22 = vector.extract_strided_slice %17 {offsets = [0, 8], sizes = [1, 8], strides = [1, 1]} : vector<1x32xf32> to vector<1x8xf32>
    %23 = arith.addf %19, %22 : vector<1x8xf32>
    %24 = vector.extract_strided_slice %13 {offsets = [0, 16], sizes = [1, 8], strides = [1, 1]} : vector<1x32xf32> to vector<1x8xf32>
    %25 = arith.addf %21, %24 : vector<1x8xf32>
    %26 = vector.extract_strided_slice %17 {offsets = [0, 16], sizes = [1, 8], strides = [1, 1]} : vector<1x32xf32> to vector<1x8xf32>
    %27 = arith.addf %23, %26 : vector<1x8xf32>
    %28 = vector.extract_strided_slice %13 {offsets = [0, 24], sizes = [1, 8], strides = [1, 1]} : vector<1x32xf32> to vector<1x8xf32>
    %29 = arith.addf %25, %28 : vector<1x8xf32>
    %30 = vector.extract_strided_slice %17 {offsets = [0, 24], sizes = [1, 8], strides = [1, 1]} : vector<1x32xf32> to vector<1x8xf32>
    %31 = arith.addf %27, %30 : vector<1x8xf32>
    %cst_11 = arith.constant 6.400000e+01 : f32
    %32 = vector.broadcast %cst_11 : f32 to vector<1x8xf32>
    %33 = arith.divf %29, %32 : vector<1x8xf32>
    %cst_12 = arith.constant 6.400000e+01 : f32
    %34 = vector.broadcast %cst_12 : f32 to vector<1x8xf32>
    %35 = arith.divf %31, %34 : vector<1x8xf32>
    %36 = arith.mulf %33, %33 : vector<1x8xf32>
    %37 = arith.subf %35, %36 : vector<1x8xf32>
    %cst_13 = arith.constant 9.99999974E-6 : f32
    %38 = vector.broadcast %cst_13 : f32 to vector<1x8xf32>
    %39 = arith.addf %37, %38 : vector<1x8xf32>
    %40 = math.rsqrt %39 : vector<1x8xf32>
    %41 = tpu.concatenate %33, %33, %33, %33 in 1 : vector<1x8xf32>, vector<1x8xf32>, vector<1x8xf32>, vector<1x8xf32> -> vector<1x32xf32>
    %42 = tpu.concatenate %40, %40, %40, %40 in 1 : vector<1x8xf32>, vector<1x8xf32>, vector<1x8xf32>, vector<1x8xf32> -> vector<1x32xf32>
    %c0_14 = arith.constant 0 : index
    %c0_15 = arith.constant 0 : index
    %43 = vector.load %arg5[%c0_14, %c0_15] : memref<16x32xf32, #tpu.memory_space<vmem>>, vector<16x32xf32>
    %44 = vector.broadcast %41 : vector<1x32xf32> to vector<16x32xf32>
    %45 = arith.subf %43, %44 : vector<16x32xf32>
    %46 = vector.broadcast %42 : vector<1x32xf32> to vector<16x32xf32>
    %47 = arith.mulf %45, %46 : vector<16x32xf32>
    %cst_16 = arith.constant 0.000000e+00 : f32
    %48 = vector.broadcast %cst_16 : f32 to vector<16x32xf32>
    %49 = arith.maximumf %47, %48 : vector<16x32xf32>
    %50 = arith.truncf %49 : vector<16x32xf32> to vector<16x32xbf16>
    %c0_17 = arith.constant 0 : index
    %c0_18 = arith.constant 0 : index
    %c0_19 = arith.constant 0 : index
    %51 = vector.load %arg4[%c0_17, %c0_18, %c0_19] : memref<1x16x32xbf16, #tpu.memory_space<vmem>>, vector<1x16x32xbf16>
    %52 = vector.shape_cast %51 : vector<1x16x32xbf16> to vector<16x32xbf16>
    %53 = vector.shape_cast %50 : vector<16x32xbf16> to vector<1x16x32xbf16>
    tpu.vector_store %arg4[%c0_17, %c0_18, %c0_19], %53 {strides = array<i32>} : memref<1x16x32xbf16, #tpu.memory_space<vmem>>, vector<1x16x32xbf16>,
    return
  }
  func.func @transform_0(%arg0: i32, %arg1: i32) -> (i32, i32, i32) {
    %c0_i32 = arith.constant 0 : i32
    %c0_i32_0 = arith.constant 0 : i32
    %c0_i32_1 = arith.constant 0 : i32
    return %arg0, %c0_i32, %c0_i32_0 : i32, i32, i32
  }
  func.func @transform_1(%arg0: i32, %arg1: i32) -> (i32, i32, i32) {
    %c0_i32 = arith.constant 0 : i32
    %c0_i32_0 = arith.constant 0 : i32
    %c0_i32_1 = arith.constant 0 : i32
    return %arg1, %c0_i32, %c0_i32_0 : i32, i32, i32
  }
  func.func @transform_2(%arg0: i32, %arg1: i32) -> (i32, i32, i32) {
    %c0_i32 = arith.constant 0 : i32
    %c0_i32_0 = arith.constant 0 : i32
    return %arg0, %c0_i32, %arg1 : i32, i32, i32
  }
}

</mosaic_0001>

<bundles_post_ra>
// kernel: tpu_custom_call.1
= control target key start
LH: loop header
LB: loop body
LE: loop exit
PB: predicated region body
PF: predicated region fallthrough
CT: control target
= control target key end

     0   :  { %7 = vsyncpa [#allocation4], 0  ;;  %s735_s0 = inlined_call_operand.vmem [shape: bf16[2,16,8], index: 0, kind: input, shape index: {}]   ;;  %s736_s1 = inlined_call_operand.vmem [shape: bf16[1,8,32], index: 1, kind: input, shape index: {}]   ;;  %s737_s2 = inlined_call_operand.hbm [shape: bf16[2,16,32], index: 2, kind: output, shape index: {}]  }
   0x1   :  { %9 = vsyncpa [#allocation4 + $0x1], 0  ;;  %s620_s9 = smov 0   ;;  %s622_s10 = smov 0  }
   0x2   :  { %s624_s11 = smov 0   ;;  %s626_s12 = smov 0  }
   0x3   :  { %s628_s13 = smov 0   ;;  %s630_s14 = smov 0  }
   0x4 LB: > { %s426_s15 = sadd.s32 4294967295, %s594_s14   ;;  %s427_s16 = sadd.s32 4294967294, %s594_s14   ;;  %s594_s14 = sphi %s630_s14, %s15_s14   ;;  %s590_s13 = sphi %s628_s13, %s744_s13   ;;  %s586_s12 = sphi %s626_s12, %s743_s12   ;;  %s582_s11 = sphi %s624_s11, %s742_s11   ;;  %s578_s10 = sphi %s622_s10, %s741_s10   ;;  %s574_s9 = sphi %s620_s9, %s740_s9  }
   0x5   : > { %s27_s17 = sadd.s32 1, %s590_s13  ;;  %s88_s18 = sadd.s32 1, %s582_s11 }
   0x6   : > { %p29_p0 = scmp.ge.s32.totalorder %s27_s17, 2  ;;  %p98_p1 = scmp.ne.s32.totalorder %s582_s11, %s578_s10 }
   0x7   : > { %p99_p2 = scmp.eq.s32.totalorder %s426_s15, 1  ;;  %p104_p3 = scmp.ne.s32.totalorder %s578_s10, %s574_s9 }
   0x8   : > { %s746_s17 = smov (%p29_p0, %s27_s17), 0  ;;  %p105_p5 = scmp.eq.s32.totalorder %s427_s16, 1 }
   0x9   : > { %p660_p4 = por %p99_p2, %p98_p1  ;;  %s83_s20 = ssub.s32 %s590_s13, %s746_s17 }
   0xa   : > { %p431_p6 = scmp.ge.s32.totalorder %s594_s14, 1  ;;  %p86_p7 = scmp.eq.s32.totalorder %s83_s20, 0 }
   0xb   : > { %p667_p8 = por %p105_p5, %p104_p3  ;;  %p138_p9 = scmp.lt.s32.totalorder %s594_s14, 3 }
   0xc   : > { %s673_s22 = scalar_select %p86_p7, %s582_s11, %s88_s18  }
   0xd   : > { %p139_p10 = pnand %p431_p6, %p138_p9 }
   0xe   : > { %p164_p11 = scmp.lt.s32.totalorder (!%p139_p10), %s586_s12, 1  ;;  %s596_s30 = smov (!%p139_p10), 104  }
   0xf   : > { %142 = sbr.rel (%p139_p10) target bundleno = 468 (0x1d4), region = 28  ;;  %s597_s3 = smov (!%p139_p10), 112  }
  0x10   : > { %s598_s4 = smov (!%p139_p10), 120   ;;  %s600_s5 = smov (!%p139_p10), 24  }
  0x11   : > { %s601_s6 = smov (!%p139_p10), 16   ;;  %s602_s7 = smov (!%p139_p10), 8  }
  0x12   : > { %s161_s8 = sand.u32 (!%p139_p10), 1, %s578_s10   ;;  %s447_s16 = sshll.u32 (!%p139_p10), %s586_s12, 3 }
  0x13   : > { %s432_s15 = sshll.u32 (!%p139_p10), %s161_s8, 3  ;;  %s335_s23 = scalar_lea.hbm (!%p139_p10), %s737_s2, %s447_s16 }
  0x14   : > { %v176_v0 = vld [vmem:[%s736_s1] sm:$0xf]  ;;  %vm186_vm0 = vcmask 1043456   ;;  %s165_s25 = scalar_select %p164_p11, %s586_s12, 1  ;;  %vm182_vm1 = vcmask 64512   ;;  %vm204_vm2 = vcmask 261120  }
  0x15   : > { %v188_v1 = vsel %vm186_vm0, %v176_v0, 0  ;;  %v599_v27 = vmov 64.0   ;;  %vm290_vm7 = vcmask 130048   ;;  %vm292_vm8 = vcmask 195584   ;;  %s163_s24 = scalar_lea.vmem [#allocation3], %s432_s15  ;;  %s323_s12 = scalar_lea.sflag [#allocation4], %s161_s8 }
  0x16   : > { %197 = vmatpush.bf16.msra.mxu0 %v188_v1  ;;  %s445_s26 = sshll.u32 %s165_s25, 3  ;;  %512 = vrcp.f32 %v599_v27  ;;  %s336_s25 = sshll.u32 %s163_s24, 4  ;;  %vm319_vm9 = vcmask 257024   ;;  %s337_s25 = int_to_ptr.vmem [resolvable:$true] %s336_s25 }
  0x17   : > { %s168_s29 = scalar_lea.vmem %s735_s0, %s445_s26  ;;  %s338_s26 = sshll.u32 %s335_s23, 4  ;;  %s339_s26 = int_to_ptr.hbm [resolvable:$true] %s338_s26 }
  0x18   : > { %v446_v2 = vld [vmem:[%s168_s29] sm:$0xff]  ;;  %s530_s27 = sshra.s32 %s339_s26, 4  ;;  %s531_s27 = int_to_ptr.hbm [resolvable:$true] %s530_s27 }
  0x19   : > { %439 = vmatmul.msk.bf16.vlgmr.msra.gmra.mxu0 %vm182_vm1, %v446_v2  ;;  %s532_s28 = scalar_lea.hbm %s531_s27, 8  ;;  %p537_p1 = scmp.lt.s32.totalorder %s531_s27, %s737_s2 }
  0x1a   : > { %p533_p12 = scmp.ne.s32.totalorder %s531_s27, %s532_s28 }
  0x1c   : > { %v513_v28 = vpop.eup %512  ;;  %p534_p13 = pnand %p533_p12, %p660_p4 }
  0x1d   : > { %v258_v29 = vmul.f32 64.0, %v513_v28  ;;  %vm262_vm3 = vweird.f32 %v513_v28 }
  0x1e   : > { %p535_p0 = pneg %p534_p13 }
  0x1f   : > { %v259_v30 = vsub.f32 1.0, %v258_v29 }
  0x21   : > { %v260_v31 = vmul.f32 %v513_v28, %v259_v30 }
  0x23   : > { %v261_v33 = vadd.f32 %v513_v28, %v260_v31 }
  0x25   : > { %v263_v38 = vsel %vm262_vm3, %v513_v28, %v261_v33 }
  0x96   : > { %v199_v3 = vpop.f32.mrf.mxu0 }
  0x97   : > { %205 = vst.msk [vmem:[#allocation2] sm:$0xff] %vm204_vm2, %v199_v3 }
  0x9e   : > { %v201_v4 = vpop.f32.mrf.mxu0  ;;  %v684_v5 = vld [vmem:[#allocation2] sm:$0xff] }
  0x9f   : > { %206 = vst.msk [vmem:[#allocation2 + $0x8] sm:$0xff] %vm204_vm2, %v201_v4  ;;  %v219_v6 = vmul.f32 %v684_v5, %v684_v5  ;;  %v209_v8 = vsel %vm204_vm2, %v684_v5, 0.0 }
  0xa1   : > { %v221_v12 = vsel %vm204_vm2, %v219_v6, 0.0 }
  0xa6   : > { %v688_v7 = vld [vmem:[#allocation2 + $0x8] sm:$0xff] }
  0xa7   : > { %v210_v9 = vsel %vm204_vm2, %v688_v7, 0.0  ;;  %v220_v10 = vmul.f32 %v688_v7, %v688_v7 }
  0xa8   : > { %v211_v11 = vadd.f32 %v210_v9, %v209_v8 }
  0xa9   : > { %v222_v13 = vsel %vm204_vm2, %v220_v10, 0.0 }
  0xaa   : > { %v212_v14 = vrot.slane %v211_v11, 4  ;;  %v223_v15 = vadd.f32 %v222_v13, %v221_v12 }
  0xac   : > { %v213_v16 = vadd.f32 %v212_v14, %v211_v11  ;;  %v224_v17 = vrot.slane %v223_v15, 4 }
  0xae   : > { %v214_v18 = vrot.slane %v213_v16, 2  ;;  %v225_v19 = vadd.f32 %v224_v17, %v223_v15 }
  0xb0   : > { %v215_v20 = vadd.f32 %v214_v18, %v213_v16  ;;  %v226_v21 = vrot.slane %v225_v19, 2 }
  0xb2   : > { %v216_v22 = vrot.slane %v215_v20, 1  ;;  %v227_v24 = vadd.f32 %v226_v21, %v225_v19 }
  0xb4   : > { %v217_v23 = vadd.f32 %v216_v22, %v215_v20  ;;  %v228_v25 = vrot.slane %v227_v24, 1 }
  0xb6   : > { %249 = vrot.lane.b32.xlu2 %v217_v23, %s596_s30  ;;  %241 = vrot.lane.b32.xlu1 %v217_v23, %s597_s3  ;;  %v229_v26 = vadd.f32 %v228_v25, %v227_v24 }
  0xb7   : > { %232 = vrot.lane.b32.xlu0 %v217_v23, %s598_s4 }
  0xbe   : > { %253 = vrot.lane.b32.xlu2 %v229_v26, %s596_s30  ;;  %245 = vrot.lane.b32.xlu1 %v229_v26, %s597_s3  ;;  %s536_s3 = scalar_lea.hbm %s737_s2, 16 }
  0xbf   : > { %237 = vrot.lane.b32.xlu0 %v229_v26, %s598_s4  ;;  %p538_p2 = scmp.lt.s32.totalorder %s536_s3, %s532_s28 }
  0xc1   : > { %p539_p3 = por %p538_p2, %p537_p1 }
  0xc3   : > { %p540_p5 = pnand %p539_p3, %p535_p0 }
 0x110   : > { %v250_v36 = vpop.permute.xlu2 %249 }
 0x118   : > { %v254_v45 = vpop.permute.xlu2 %253 }
 0x128   : > { %v242_v32 = vpop.permute.xlu1 %241 }
 0x129   : > { %v233_v34 = vpop.permute.xlu0 %232 }
 0x12a   : > { %v235_v35 = vadd.f32 %v233_v34, %v217_v23 }
 0x12c   : > { %v244_v37 = vadd.f32 %v242_v32, %v235_v35 }
 0x12e   : > { %v252_v39 = vadd.f32 %v250_v36, %v244_v37 }
 0x130   : > { %v264_v40 = vmul.f32 %v263_v38, %v252_v39  ;;  %v246_v43 = vpop.permute.xlu1 %245 }
 0x131   : > { %v238_v41 = vpop.permute.xlu0 %237 }
 0x132   : > { %v240_v42 = vadd.f32 %v238_v41, %v229_v26  ;;  %286 = vrot.lane.b32.xlu2 %v264_v40, %s600_s5  ;;  %283 = vrot.lane.b32.xlu1 %v264_v40, %s601_s6  ;;  %v266_v47 = vmul.f32 %v264_v40, %v264_v40 }
 0x133   : > { %280 = vrot.lane.b32.xlu0 %v264_v40, %s602_s7 }
 0x134   : > { %v248_v44 = vadd.f32 %v246_v43, %v240_v42 }
 0x136   : > { %v256_v46 = vadd.f32 %v254_v45, %v248_v44 }
 0x138   : > { %v265_v48 = vmul.f32 %v263_v38, %v256_v46 }
 0x13a   : > { %v267_v49 = vsub.f32 %v265_v48, %v266_v47 }
 0x13c   : > { %v268_v50 = vadd.f32 1e-05, %v267_v49 }
 0x13e   : > { %514 = vrsqrt.f32 %v268_v50  ;;  %vm275_vm5 = vweird.f32 %v268_v50 }
 0x144   : > { %v515_v51 = vpop.eup %514 }
 0x145   : > { %v270_v52 = vmul.f32 %v515_v51, %v268_v50  ;;  %vm276_vm4 = vweird.f32 %v515_v51 }
 0x146   : > { %vm277_vm6 = vmor %vm275_vm5, %vm276_vm4 }
 0x147   : > { %v271_v53 = vmul.f32 %v515_v51, %v270_v52 }
 0x149   : > { %v272_v54 = vmul.f32 0.5, %v271_v53 }
 0x14b   : > { %v273_v55 = vsub.f32 1.5, %v272_v54 }
 0x14d   : > { %v274_v56 = vmul.f32 %v515_v51, %v273_v55 }
 0x14f   : > { %v278_v57 = vsel %vm277_vm6, %v515_v51, %v274_v56 }
 0x150   : > { %301 = vrot.lane.b32.xlu2 %v278_v57, %s600_s5  ;;  %298 = vrot.lane.b32.xlu1 %v278_v57, %s601_s6 }
 0x151   : > { %295 = vrot.lane.b32.xlu0 %v278_v57, %s602_s7 }
 0x18c   : > { %v287_v61 = vpop.permute.xlu2 %286 }
 0x1a4   : > { %v284_v59 = vpop.permute.xlu1 %283 }
 0x1a5   : > { %v281_v58 = vpop.permute.xlu0 %280 }
 0x1a6   : > { %v289_v60 = vsel %vm182_vm1, %v264_v40, %v281_v58 }
 0x1a7   : > { %v291_v62 = vsel %vm290_vm7, %v289_v60, %v284_v59 }
 0x1a8   : > { %v293_v63 = vsel %vm292_vm8, %v291_v62, %v287_v61 }
 0x1a9   : > { %v309_v1 = vperm.slane %v293_v63, 0 }
 0x1aa   : > { %v302_v4 = vpop.permute.xlu2 %301 }
 0x1ab   : > { %v310_v9 = vsub.f32 %v684_v5, %v309_v1  ;;  %v311_v10 = vsub.f32 %v688_v7, %v309_v1 }
 0x1c2   : > { %v299_v0 = vpop.permute.xlu1 %298 }
 0x1c3   : > { %v296_v2 = vpop.permute.xlu0 %295 }
 0x1c4   : > { %v304_v3 = vsel %vm182_vm1, %v278_v57, %v296_v2 }
 0x1c5   : > { %v305_v6 = vsel %vm290_vm7, %v304_v3, %v299_v0 }
 0x1c6   : > { %v306_v8 = vsel %vm292_vm8, %v305_v6, %v302_v4 }
 0x1c7   : > { %v312_v11 = vperm.slane %v306_v8, 0 }
 0x1c9   : > { %v313_v12 = vmul.f32 %v312_v11, %v310_v9  ;;  %v314_v13 = vmul.f32 %v312_v11, %v311_v10 }
 0x1cb   : > { %v315_v14 = vmax.f32 %v313_v12, 0.0  ;;  %v316_v15 = vmax.f32 %v314_v13, 0.0 }
 0x1cd   : > { %v317_v16 = vpack.c.bf16 %v315_v14, %v315_v14  ;;  %v318_v17 = vpack.c.bf16 %v316_v15, %v316_v15 }
 0x1cf   : > { %320 = vst.msk [vmem:[%s163_s24] sm:$0xf] %vm319_vm9, %v317_v16 }
 0x1d0   : > { %321 = vst.msk [vmem:[%s163_s24 + $0x4] sm:$0xf] %vm319_vm9, %v318_v17 }
 0x1d1   : > { %543 = shalt.err (!%p540_p5)
}
 0x1d2   : > { %s603_s6 = smov 64   ;;  %s604_s7 = smov 4  }
 0x1d3   : > { %448 = dma.vmem_to_hbm [thread:$0]  (%p660_p4), %s337_s25, 128, %s339_s26, %s323_s12, %s603_s6, %s603_s6, %s604_s7  }
 0x1d4 PF: > { %p454_p6 = scmp.ge.s32.totalorder %s594_s14, 2  ;;  %s353_s8 = sand.u32 1, %s574_s9  }
 0x1d5   : > { %s354_s15 = scalar_lea.sflag [#allocation4], %s353_s8 }
 0x1d6   : > { %p451_p7 = pnand %p454_p6, %p667_p8 }
 0x1d8   : > { %p452_p9 = pneg %p451_p7 }
 0x1da   : > { %569 = dma.done.wait (%p452_p9), %s354_s15, 128  }
 0x1db   : > { %571 = vsyncadd (%p452_p9), %s354_s15, 4294967168  ;;  %s15_s14 = sadd.s32 1, %s594_s14   ;;  %s740_s9 = smov %s578_s10 }
 0x1dc   : > { %p12_p10 = scmp.ge.s32.totalorder %s15_s14, 4   ;;  %s741_s10 = smov %s582_s11 }
 0x1dd   : > { %s742_s11 = smov %s673_s22  ;;  %s743_s12 = smov %s590_s13 }
 0x1de   : > { %s744_s13 = smov %s746_s17  ;;  %14 = sbr.rel (!%p12_p10) target bundleno = 4 (0x4), region = 66 }
 0x1e3   :  { %360 = vsyncpa [#allocation4], 1 }
 0x1e4   :  { %362 = vsyncpa [#allocation4 + $0x1], 1 }

</bundles_post_ra>
